<compile_context>
chip_gen: v5e
topology: v5e:2x2
jax: 0.10.0
libtpu: 0.0.40
codegen_flags: <defaults>
</compile_context>

<pallas_src>
import jax
import jax.numpy as jnp
from jax.experimental import pallas as pl
from jax.experimental.pallas import tpu as pltpu


def _identity_kernel(x_ref, o_ref):
    # Pure elementwise pass-through on the current VMEM tile.
    o_ref[...] = x_ref[...]


_MAX_BLOCK_BYTES = 4 << 20  # 4 MiB/block: in+out double-buffered fits every gen's VMEM budget.


def _pick_lane_width(total_elems):
    """Largest lane-dense width (multiple of 128) dividing the element count."""
    for lane in (2048, 1024, 512, 256, 128):
        if total_elems % lane == 0:
            return lane
    return None


def base_model_forward(x):
    """Identity 'forward' for the abstract BaseModel as a Pallas TPU copy.

    Small inputs: one whole-array block, no grid (single DMA in / DMA out).
    Large inputs: flatten to (rows, L) with L a multiple of 128 and tile rows
    with large lane-dense blocks.
    """
    total = x.size
    nbytes = total * x.dtype.itemsize
    lane = _pick_lane_width(total)

    if lane is None:
        # TODO(synk): element count not divisible by 128; fall back to a single
        #             whole-array block (fine for small/odd-shaped inputs).
        return pl.pallas_call(
            _identity_kernel,
            out_shape=jax.ShapeDtypeStruct(x.shape, x.dtype),
        )(x)

    rows = total // lane
    x2 = x.reshape(rows, lane)

    if nbytes <= _MAX_BLOCK_BYTES:
        # Whole tensor fits trivially in VMEM: single lane-dense block, no grid.
        y2 = pl.pallas_call(
            _identity_kernel,
            out_shape=jax.ShapeDtypeStruct((rows, lane), x.dtype),
        )(x2)
        return y2.reshape(x.shape)

    # Large-input path: tile the flattened rows with big lane-dense blocks.
    bytes_per_row = lane * x.dtype.itemsize
    block_rows = max(8, (_MAX_BLOCK_BYTES // bytes_per_row) // 8 * 8)
    block_rows = min(rows, block_rows)
    grid = (pl.cdiv(rows, block_rows),)

    y2 = pl.pallas_call(
        _identity_kernel,
        out_shape=jax.ShapeDtypeStruct((rows, lane), x.dtype),
        grid=grid,
        in_specs=[pl.BlockSpec((block_rows, lane), lambda i: (i, 0))],
        out_specs=pl.BlockSpec((block_rows, lane), lambda i: (i, 0)),
        compiler_params=pltpu.CompilerParams(
            dimension_semantics=("parallel",),
            vmem_limit_bytes=64 << 20,
        ),
    )(x2)
    return y2.reshape(x.shape)


if __name__ == "__main__":
    key = jax.random.PRNGKey(0)
    # Small NCHW input consistent with a conv-style model: batch=2, C=4, 16x16.
    x = jax.random.normal(key, (2, 4, 16, 16), dtype=jnp.float32)

    y = base_model_forward(x)
    y = jax.block_until_ready(y)

    # Identity semantics check (the only well-defined behavior we can verify).
    assert y.shape == x.shape and y.dtype == x.dtype
    assert bool(jnp.all(y == x))

    print("KERNEL_OK")
</pallas_src>

<mosaic_0001>
module attributes {stable_mosaic.version = 11 : i64} {
  func.func @_identity_kernel(%arg0: memref<1x2048xf32, #tpu.memory_space<vmem>>, %arg1: memref<1x2048xf32, #tpu.memory_space<vmem>>) attributes {dimension_semantics = [], scalar_prefetch = 0 : i64, scratch_operands = 0 : i64, tpu.core_type = #tpu.core_type<tc>} {
    %c0 = arith.constant 0 : index
    %c0_0 = arith.constant 0 : index
    %0 = vector.load %arg0[%c0, %c0_0] : memref<1x2048xf32, #tpu.memory_space<vmem>>, vector<1x2048xf32>
    %c0_1 = arith.constant 0 : index
    %c0_2 = arith.constant 0 : index
    %1 = vector.load %arg1[%c0_1, %c0_2] : memref<1x2048xf32, #tpu.memory_space<vmem>>, vector<1x2048xf32>
    tpu.vector_store %arg1[%c0_1, %c0_2], %0 {strides = array<i32>} : memref<1x2048xf32, #tpu.memory_space<vmem>>, vector<1x2048xf32>,
    return
  }
}

</mosaic_0001>

<bundles_post_ra>
// kernel: tpu_custom_call.1
= control target key start
LH: loop header
LB: loop body
LE: loop exit
PB: predicated region body
PF: predicated region fallthrough
CT: control target
= control target key end

     0   :  { %6 = vsyncpa [#allocation3], 0  ;;  %s116_s0 = inlined_call_operand.hbm [shape: f32[1,2048], index: 0, kind: input, shape index: {}]   ;;  %s117_s1 = inlined_call_operand.hbm [shape: f32[1,2048], index: 1, kind: output, shape index: {}]  }
   0x1   :  { %7 = vsyncpa [#allocation4], 0  ;;  %s13_s8 = sshll.u32 %s116_s0, 4  ;;  %s98_s9 = smov [#allocation2]   ;;  %s14_s8 = int_to_ptr.hbm [resolvable:$true] %s13_s8 }
   0x2   :  { %s15_s10 = sshll.u32 %s98_s9, 4  ;;  %s16_s10 = int_to_ptr.vmem [resolvable:$true] %s15_s10 }
   0x3   :  { %18 = dma.hbm_to_vmem [thread:$0]  %s14_s8, 256, %s16_s10, [#allocation3]  }
   0x4   :  { %94 = dma.done.wait [#allocation3], 256  }
   0x5   :  { %95 = vsyncadd [#allocation3], 4294967040  ;;  %s99_s11 = smov [#allocation5]   ;;  %s34_s15 = sshll.u32 %s117_s1, 4  ;;  %v23_v0 = vld [vmem:[#allocation2] sm:$0xff]  ;;  %v24_v1 = vld [vmem:[#allocation2 + $0x8] sm:$0xff]  ;;  %s35_s15 = int_to_ptr.hbm [resolvable:$true] %s34_s15 }
   0x6   :  { %s32_s12 = sshll.u32 %s99_s11, 4  ;;  %25 = vst [vmem:[#allocation5] sm:$0xff] %v23_v0  ;;  %s33_s12 = int_to_ptr.vmem [resolvable:$true] %s32_s12 }
   0x7   :  { %26 = vst [vmem:[#allocation5 + $0x8] sm:$0xff] %v24_v1 }
   0x8   :  { %37 = dma.vmem_to_hbm [thread:$0]  %s33_s12, 256, %s35_s15, [#allocation4]  }
   0x9   :  { %96 = dma.done.wait [#allocation4], 256  }
   0xa   :  { %97 = vsyncadd [#allocation4], 4294967040 }
   0xb   :  { %42 = vsyncpa [#allocation3], 1 }
   0xc   :  { %43 = vsyncpa [#allocation4], 1 }

</bundles_post_ra>
